<compile_context>
chip_gen: v5e
topology: v5e:2x2
jax: 0.10.0
libtpu: 0.0.40
codegen_flags: <defaults>
</compile_context>

<pallas_src>
import jax
import jax.numpy as jnp
from jax import lax
from jax.experimental import pallas as pl
from jax.experimental.pallas import tpu as pltpu

# ----- problem sizes -----
D_IN_A = 2      # model A input dim  ('x','y')
D_IN_B = 3      # model B input dim  ('x','y','t')
D_IN = 3        # combined input space dim
H = 32          # hidden width of each sub-model
H2 = 2 * H      # fused hidden width
D_OUT_A = 2     # model A output dim ('u' is 2-dimensional)
D_OUT_B = 1     # model B output dim ('p' is 1-dimensional)
D_OUT = D_OUT_A + D_OUT_B

CHUNK_N = 2048            # lanes per inner-loop iteration (bounds VMEM temporaries)
DEFAULT_TILE_N = 32768    # lanes per grid step (amortizes ~0.35 us/step overhead)
VMEM_LIMIT_BYTES = 32 * 1024 * 1024   # safe scoped limit on v5e / v6e / v7x


def _cdiv(a, b):
    return -(-a // b)


def _round_up(x, m):
    return _cdiv(x, m) * m


def _num_tensorcores():
    """Best-effort TensorCores-per-chip detection (2 on v7x, 1 on v5e/v6e)."""
    try:
        dev = jax.devices()[0]
        if dev.platform != "tpu":
            return 1
        kind = str(getattr(dev, "device_kind", "")).lower()
        if "v7" in kind:
            return 2
        ncores = getattr(dev, "num_cores", None)
        if isinstance(ncores, int) and ncores > 1:
            return ncores
    except Exception:
        pass
    return 1


def _choose_tiling(n, tile_req, multi_core):
    """Pick (tile, chunk, steps, n_pad) with tile = k*chunk and n_pad = steps*tile >= n.

    * chunk bounds the in-kernel working set (hidden is (H2, chunk), not (H2, tile)).
    * On multi-TC chips (v7x) the grid is kept even and >= 2 steps by SHRINKING the
      tile, never by appending a dead full-size tile (which wastes work on 1-TC chips).
    """
    lane_n = _round_up(max(n, 1), 128)
    chunk = lane_n if lane_n <= CHUNK_N else CHUNK_N
    max_chunks = _cdiv(lane_n, chunk)
    cpt = max(1, min(tile_req // chunk, max_chunks))       # chunks per tile
    steps = _cdiv(max_chunks, cpt)
    if multi_core and max_chunks >= 2 and (steps < 2 or steps % 2 == 1):
        even_steps = max(2, steps + (steps % 2))
        cpt = max(1, _cdiv(max_chunks, even_steps))
        steps = even_steps
    tile = cpt * chunk
    n_pad = steps * tile
    return tile, chunk, steps, n_pad


def _make_kernel(tile_n, chunk_n):
    n_inner = tile_n // chunk_n

    def kernel(pts_ref, w1x_ref, w1y_ref, w1t_ref, b1_ref, w2_ref, b2_ref, out_ref):
        # Resident fused weights: read once per grid step, reused across chunks.
        w1x = w1x_ref[...]            # (H2, 1)
        w1y = w1y_ref[...]            # (H2, 1)
        w1t = w1t_ref[...]            # (H2, 1)  (zeros for the model-A half)
        b1 = b1_ref[...]              # (H2, 1)
        w2 = w2_ref[...]              # (D_OUT, H2) block-diagonal second layer
        b2 = b2_ref[...]              # (D_OUT, 1)

        def compute(x):               # x: (D_IN, chunk) f32
            # Layer 1 (K=3): VPU broadcast-FMAs (skip the nearly-empty MXU matmul).
            h = b1 + w1x * x[0:1, :] + w1y * x[1:2, :] + w1t * x[2:3, :]
            h = jnp.tanh(h)           # (H2, chunk) on the EUP
            # Layer 2 (K=64): single MXU matmul with f32 accumulation.
            return jnp.dot(w2, h, preferred_element_type=jnp.float32) + b2

        if n_inner == 1:
            out_ref[...] = compute(pts_ref[...])
        else:
            def body(c, carry):
                off = pl.multiple_of(c * chunk_n, chunk_n)
                x = pts_ref[:, pl.ds(off, chunk_n)]
                out_ref[:, pl.ds(off, chunk_n)] = compute(x)
                return carry
            lax.fori_loop(0, n_inner, body, 0, unroll=min(4, n_inner))

    return kernel


def prepare_params(params):
    """One-time trace-time fusion of the two sub-MLPs into resident kernel arrays.

    Hoisted out of the forward path so the hot path is a single pallas_call.
    """
    f32 = jnp.float32
    w1a, b1a, w2a, b2a = params["w1a"], params["b1a"], params["w2a"], params["b2a"]
    w1b, b1b, w2b, b2b = params["w1b"], params["b1b"], params["w2b"], params["b2b"]

    # Fused first layer (3, 64): zero 't' row for model A, packed side by side.
    w1 = jnp.concatenate(
        [jnp.concatenate([w1a, jnp.zeros((D_IN - D_IN_A, H), f32)], axis=0), w1b],
        axis=1)                                                     # (3, H2)
    b1 = jnp.concatenate([b1a, b1b], axis=1)                        # (1, H2)
    # Fused second layer: block diagonal [[w2a, 0], [0, w2b]] -> (H2, 3).
    w2 = jnp.block([[w2a, jnp.zeros((H, D_OUT_B), f32)],
                    [jnp.zeros((H, D_OUT_A), f32), w2b]])           # (H2, D_OUT)
    b2 = jnp.concatenate([b2a, b2b], axis=1)                        # (1, D_OUT)

    return {
        "w1x": w1[0:1, :].T.astype(f32),    # (H2, 1)
        "w1y": w1[1:2, :].T.astype(f32),    # (H2, 1)
        "w1t": w1[2:3, :].T.astype(f32),    # (H2, 1)
        "b1":  b1.T.astype(f32),            # (H2, 1)
        "w2":  w2.T.astype(f32),            # (D_OUT, H2)
        "b2":  b2.T.astype(f32),            # (D_OUT, 1)
    }


def parallel_forward_t(points_t, packed, tile_n=DEFAULT_TILE_N):
    """Transpose-free hot path: points_t (D_IN, N) -> output (D_OUT, N), f32."""
    d, n = points_t.shape
    assert d == D_IN
    f32 = jnp.float32

    multi_core = _num_tensorcores() >= 2
    tile, chunk, steps, n_pad = _choose_tiling(n, int(tile_n), multi_core)

    pts = points_t.astype(f32)
    if n_pad != n:
        pts = jnp.pad(pts, ((0, 0), (0, n_pad - n)))

    const = lambda i: (0, 0)
    out_t = pl.pallas_call(
        _make_kernel(tile, chunk),
        out_shape=jax.ShapeDtypeStruct((D_OUT, n_pad), f32),
        grid_spec=pltpu.PrefetchScalarGridSpec(
            num_scalar_prefetch=0,
            grid=(steps,),
            in_specs=[
                pl.BlockSpec((D_IN, tile), lambda i: (0, i)),   # points^T tile
                pl.BlockSpec((H2, 1), const),                   # W1 'x' column
                pl.BlockSpec((H2, 1), const),                   # W1 'y' column
                pl.BlockSpec((H2, 1), const),                   # W1 't' column
                pl.BlockSpec((H2, 1), const),                   # b1
                pl.BlockSpec((D_OUT, H2), const),               # block-diag W2^T
                pl.BlockSpec((D_OUT, 1), const),                # b2
            ],
            out_specs=pl.BlockSpec((D_OUT, tile), lambda i: (0, i)),
        ),
        compiler_params=pltpu.CompilerParams(
            dimension_semantics=("parallel",),
            vmem_limit_bytes=VMEM_LIMIT_BYTES),
    )(pts, packed["w1x"], packed["w1y"], packed["w1t"],
      packed["b1"], packed["w2"], packed["b2"])

    return out_t[:, :n] if n_pad != n else out_t


def parallel_forward(points, params, tile_n=DEFAULT_TILE_N, packed=None):
    """(N, D_IN) -> (N, D_OUT) compatibility wrapper (PyTorch layout).

    Each .T costs one extra HBM pass; prefer prepare_params + parallel_forward_t
    with the (D, N) layout in performance-critical surrounding code.
    """
    if packed is None:
        packed = prepare_params(params)
    out_t = parallel_forward_t(points.T, packed, tile_n=tile_n)
    return out_t.T


def init_params(key):
    """Deterministic synthetic parameter init (shapes follow the sub-MLPs)."""
    ks = jax.random.split(key, 8)
    scale = 0.1
    return {
        "w1a": scale * jax.random.normal(ks[0], (D_IN_A, H), jnp.float32),
        "b1a": scale * jax.random.normal(ks[1], (1, H), jnp.float32),
        "w2a": scale * jax.random.normal(ks[2], (H, D_OUT_A), jnp.float32),
        "b2a": scale * jax.random.normal(ks[3], (1, D_OUT_A), jnp.float32),
        "w1b": scale * jax.random.normal(ks[4], (D_IN_B, H), jnp.float32),
        "b1b": scale * jax.random.normal(ks[5], (1, H), jnp.float32),
        "w2b": scale * jax.random.normal(ks[6], (H, D_OUT_B), jnp.float32),
        "b2b": scale * jax.random.normal(ks[7], (1, D_OUT_B), jnp.float32),
    }


def parallel_reference(points, p):
    """Pure-JAX reference of Parallel.forward with the two FCN sub-models."""
    xa = points[:, :D_IN_A]
    ya = jnp.tanh(xa @ p["w1a"] + p["b1a"]) @ p["w2a"] + p["b2a"]
    xb = points
    yb = jnp.tanh(xb @ p["w1b"] + p["b1b"]) @ p["w2b"] + p["b2b"]
    return jnp.concatenate([ya, yb], axis=-1)


if __name__ == "__main__":
    key = jax.random.PRNGKey(0)
    k_pts, k_par = jax.random.split(key)
    params = init_params(k_par)
    packed = prepare_params(params)   # one-time weight packing (hoisted off hot path)

    # Small aligned batch (single grid step, single inner chunk).
    N = 256
    points = jax.random.normal(k_pts, (N, D_IN), jnp.float32)
    out = jax.block_until_ready(parallel_forward(points, params, packed=packed))
    ref = parallel_reference(points, params)
    assert out.shape == (N, D_OUT)
    assert jnp.allclose(out, ref, atol=2e-5, rtol=2e-5)

    # Ragged batch via the transpose-free (D, N) fast path (exercises lane padding).
    N2 = 200
    points2 = jax.random.normal(k_pts, (N2, D_IN), jnp.float32)
    out2_t = jax.block_until_ready(parallel_forward_t(points2.T, packed))
    ref2 = parallel_reference(points2, params)
    assert out2_t.shape == (D_OUT, N2)
    assert jnp.allclose(out2_t.T, ref2, atol=2e-5, rtol=2e-5)

    # Larger batch with a small tile: exercises the multi-step grid and the
    # in-kernel fori_loop over 2048-lane chunks.
    N3 = 5000
    points3 = jax.random.normal(k_pts, (N3, D_IN), jnp.float32)
    out3 = jax.block_until_ready(
        parallel_forward(points3, params, tile_n=4096, packed=packed))
    ref3 = parallel_reference(points3, params)
    assert out3.shape == (N3, D_OUT)
    assert jnp.allclose(out3, ref3, atol=2e-5, rtol=2e-5)

    print("KERNEL_OK")
</pallas_src>

<mosaic_0001>
module attributes {stable_mosaic.version = 11 : i64} {
  func.func @kernel(%arg0: i32, %arg1: memref<3x256xf32, #tpu.memory_space<vmem>>, %arg2: memref<64x1xf32, #tpu.memory_space<vmem>>, %arg3: memref<64x1xf32, #tpu.memory_space<vmem>>, %arg4: memref<64x1xf32, #tpu.memory_space<vmem>>, %arg5: memref<64x1xf32, #tpu.memory_space<vmem>>, %arg6: memref<3x64xf32, #tpu.memory_space<vmem>>, %arg7: memref<3x1xf32, #tpu.memory_space<vmem>>, %arg8: memref<3x256xf32, #tpu.memory_space<vmem>>) attributes {dimension_semantics = [#tpu.dimension_semantics<parallel>], iteration_bounds = array<i64: 1>, scalar_prefetch = 0 : i64, scratch_operands = 0 : i64, tpu.core_type = #tpu.core_type<tc>, window_params = [{transform_indices = @transform_0, window_bounds = array<i64: 3, 256>}, {pipeline_mode = #tpu.pipeline_mode<synchronous>, transform_indices = @transform_1, window_bounds = array<i64: 64, 1>}, {pipeline_mode = #tpu.pipeline_mode<synchronous>, transform_indices = @transform_2, window_bounds = array<i64: 64, 1>}, {pipeline_mode = #tpu.pipeline_mode<synchronous>, transform_indices = @transform_3, window_bounds = array<i64: 64, 1>}, {pipeline_mode = #tpu.pipeline_mode<synchronous>, transform_indices = @transform_4, window_bounds = array<i64: 64, 1>}, {pipeline_mode = #tpu.pipeline_mode<synchronous>, transform_indices = @transform_5, window_bounds = array<i64: 3, 64>}, {pipeline_mode = #tpu.pipeline_mode<synchronous>, transform_indices = @transform_6, window_bounds = array<i64: 3, 1>}, {transform_indices = @transform_7, window_bounds = array<i64: 3, 256>}]} {
    %c0 = arith.constant 0 : index
    %c0_0 = arith.constant 0 : index
    %0 = vector.load %arg2[%c0, %c0_0] : memref<64x1xf32, #tpu.memory_space<vmem>>, vector<64x1xf32>
    %c0_1 = arith.constant 0 : index
    %c0_2 = arith.constant 0 : index
    %1 = vector.load %arg3[%c0_1, %c0_2] : memref<64x1xf32, #tpu.memory_space<vmem>>, vector<64x1xf32>
    %c0_3 = arith.constant 0 : index
    %c0_4 = arith.constant 0 : index
    %2 = vector.load %arg4[%c0_3, %c0_4] : memref<64x1xf32, #tpu.memory_space<vmem>>, vector<64x1xf32>
    %c0_5 = arith.constant 0 : index
    %c0_6 = arith.constant 0 : index
    %3 = vector.load %arg5[%c0_5, %c0_6] : memref<64x1xf32, #tpu.memory_space<vmem>>, vector<64x1xf32>
    %c0_7 = arith.constant 0 : index
    %c0_8 = arith.constant 0 : index
    %4 = vector.load %arg6[%c0_7, %c0_8] : memref<3x64xf32, #tpu.memory_space<vmem>>, vector<3x64xf32>
    %c0_9 = arith.constant 0 : index
    %c0_10 = arith.constant 0 : index
    %5 = vector.load %arg7[%c0_9, %c0_10] : memref<3x1xf32, #tpu.memory_space<vmem>>, vector<3x1xf32>
    %c0_11 = arith.constant 0 : index
    %c0_12 = arith.constant 0 : index
    %6 = vector.load %arg1[%c0_11, %c0_12] : memref<3x256xf32, #tpu.memory_space<vmem>>, vector<3x256xf32>
    %7 = vector.extract_strided_slice %6 {offsets = [0, 0], sizes = [1, 256], strides = [1, 1]} : vector<3x256xf32> to vector<1x256xf32>
    %8 = vector.broadcast %0 : vector<64x1xf32> to vector<64x256xf32>
    %9 = vector.broadcast %7 : vector<1x256xf32> to vector<64x256xf32>
    %10 = arith.mulf %8, %9 : vector<64x256xf32>
    %11 = vector.broadcast %3 : vector<64x1xf32> to vector<64x256xf32>
    %12 = arith.addf %11, %10 : vector<64x256xf32>
    %13 = vector.extract_strided_slice %6 {offsets = [1, 0], sizes = [1, 256], strides = [1, 1]} : vector<3x256xf32> to vector<1x256xf32>
    %14 = vector.broadcast %1 : vector<64x1xf32> to vector<64x256xf32>
    %15 = vector.broadcast %13 : vector<1x256xf32> to vector<64x256xf32>
    %16 = arith.mulf %14, %15 : vector<64x256xf32>
    %17 = arith.addf %12, %16 : vector<64x256xf32>
    %18 = vector.extract_strided_slice %6 {offsets = [2, 0], sizes = [1, 256], strides = [1, 1]} : vector<3x256xf32> to vector<1x256xf32>
    %19 = vector.broadcast %2 : vector<64x1xf32> to vector<64x256xf32>
    %20 = vector.broadcast %18 : vector<1x256xf32> to vector<64x256xf32>
    %21 = arith.mulf %19, %20 : vector<64x256xf32>
    %22 = arith.addf %17, %21 : vector<64x256xf32>
    %23 = math.tanh %22 : vector<64x256xf32>
    %cst = arith.constant dense<0.000000e+00> : vector<3x256xf32>
    %24 = tpu.matmul %4, %23, %cst {dimension_numbers = #tpu.dot_dimension_numbers<[1], [0], [0], [1], [0, 0, 1, 1], [], []>} : vector<3x64xf32>, vector<64x256xf32>, vector<3x256xf32> -> vector<3x256xf32>
    %25 = vector.broadcast %5 : vector<3x1xf32> to vector<3x256xf32>
    %26 = arith.addf %24, %25 : vector<3x256xf32>
    %c0_13 = arith.constant 0 : index
    %c0_14 = arith.constant 0 : index
    %27 = vector.load %arg8[%c0_13, %c0_14] : memref<3x256xf32, #tpu.memory_space<vmem>>, vector<3x256xf32>
    tpu.vector_store %arg8[%c0_13, %c0_14], %26 {strides = array<i32>} : memref<3x256xf32, #tpu.memory_space<vmem>>, vector<3x256xf32>,
    return
  }
  func.func @transform_0(%arg0: i32) -> (i32, i32) {
    %c0_i32 = arith.constant 0 : i32
    %c0_i32_0 = arith.constant 0 : i32
    return %c0_i32, %arg0 : i32, i32
  }
  func.func @transform_1(%arg0: i32) -> (i32, i32) {
    %c0_i32 = arith.constant 0 : i32
    %c0_i32_0 = arith.constant 0 : i32
    %c0_i32_1 = arith.constant 0 : i32
    return %c0_i32, %c0_i32_0 : i32, i32
  }
  func.func @transform_2(%arg0: i32) -> (i32, i32) {
    %c0_i32 = arith.constant 0 : i32
    %c0_i32_0 = arith.constant 0 : i32
    %c0_i32_1 = arith.constant 0 : i32
    return %c0_i32, %c0_i32_0 : i32, i32
  }
  func.func @transform_3(%arg0: i32) -> (i32, i32) {
    %c0_i32 = arith.constant 0 : i32
    %c0_i32_0 = arith.constant 0 : i32
    %c0_i32_1 = arith.constant 0 : i32
    return %c0_i32, %c0_i32_0 : i32, i32
  }
  func.func @transform_4(%arg0: i32) -> (i32, i32) {
    %c0_i32 = arith.constant 0 : i32
    %c0_i32_0 = arith.constant 0 : i32
    %c0_i32_1 = arith.constant 0 : i32
    return %c0_i32, %c0_i32_0 : i32, i32
  }
  func.func @transform_5(%arg0: i32) -> (i32, i32) {
    %c0_i32 = arith.constant 0 : i32
    %c0_i32_0 = arith.constant 0 : i32
    %c0_i32_1 = arith.constant 0 : i32
    return %c0_i32, %c0_i32_0 : i32, i32
  }
  func.func @transform_6(%arg0: i32) -> (i32, i32) {
    %c0_i32 = arith.constant 0 : i32
    %c0_i32_0 = arith.constant 0 : i32
    %c0_i32_1 = arith.constant 0 : i32
    return %c0_i32, %c0_i32_0 : i32, i32
  }
  func.func @transform_7(%arg0: i32) -> (i32, i32) {
    %c0_i32 = arith.constant 0 : i32
    %c0_i32_0 = arith.constant 0 : i32
    return %c0_i32, %arg0 : i32, i32
  }
}

</mosaic_0001>

<bundles_post_ra>
// kernel: tpu_custom_call.1
= control target key start
LH: loop header
LB: loop body
LE: loop exit
PB: predicated region body
PF: predicated region fallthrough
CT: control target
= control target key end

     0   :  { %v490_v3 = vmov 0   ;;  %s712_s0 = inlined_call_operand.vmem [shape: f32[3,256], index: 0, kind: input, shape index: {}]   ;;  %s713_s1 = inlined_call_operand.vmem [shape: f32[64,1], index: 1, kind: input, shape index: {}]   ;;  %s714_s2 = inlined_call_operand.vmem [shape: f32[64,1], index: 2, kind: input, shape index: {}]   ;;  %s715_s3 = inlined_call_operand.vmem [shape: f32[64,1], index: 3, kind: input, shape index: {}]   ;;  %s716_s4 = inlined_call_operand.vmem [shape: f32[64,1], index: 4, kind: input, shape index: {}]   ;;  %s717_s5 = inlined_call_operand.vmem [shape: f32[3,64], index: 5, kind: input, shape index: {}]   ;;  %s718_s6 = inlined_call_operand.vmem [shape: f32[3,1], index: 6, kind: input, shape index: {}]   ;;  %s719_s7 = inlined_call_operand.hbm [shape: f32[3,256], index: 7, kind: output, shape index: {}]  }
   0x1   :  { %v58_v0 = vld [vmem:[%s716_s4 + $0x38] sm:$0xff]  ;;  %v32_v2 = vld [vmem:[%s713_s1 + $0x28] sm:$0xff]  ;;  %431 = vset.pattern.permute.xlu2 %v490_v3  ;;  %430 = vset.pattern.permute.xlu1 %v490_v3 }
   0x2   :  { %v34_v1 = vld [vmem:[%s713_s1 + $0x38] sm:$0xff]  ;;  %429 = vset.pattern.permute.xlu0 %v490_v3  ;;  %162 = vperm.xlu1 %430, %v58_v0  }
   0x3   :  { %99 = vperm.xlu0 %429, %v34_v1   ;;  %89 = vperm.xlu2 %431, %v32_v2  }
   0x4   :  { %12 = vsyncpa [#allocation3], 0  ;;  %v42_v4 = vld [vmem:[%s714_s2 + $0x38] sm:$0xff]  ;;  %v33_v5 = vld [vmem:[%s713_s1 + $0x30] sm:$0xff]  ;;  %vm358_vm0 = vcmask 523264   ;;  %s416_s23 = sshll.u32 %s719_s7, 4  ;;  %s417_s23 = int_to_ptr.hbm [resolvable:$true] %s416_s23 }
   0x5   :  { %v57_v6 = vld [vmem:[%s716_s4 + $0x30] sm:$0xff]  ;;  %v50_v7 = vld [vmem:[%s715_s3 + $0x38] sm:$0xff]  ;;  %v31_v9 = vld [vmem:[%s713_s1 + $0x20] sm:$0xff]  ;;  %vm405_vm1 = vcmask 1043456  }
   0x6   :  { %v41_v8 = vld [vmem:[%s714_s2 + $0x30] sm:$0xff]  ;;  %v40_v10 = vld [vmem:[%s714_s2 + $0x28] sm:$0xff]  ;;  %v55_v13 = vld [vmem:[%s716_s4 + $0x20] sm:$0xff] }
   0x7   :  { %v56_v11 = vld [vmem:[%s716_s4 + $0x28] sm:$0xff]  ;;  %v49_v12 = vld [vmem:[%s715_s3 + $0x30] sm:$0xff]  ;;  %v39_v14 = vld [vmem:[%s714_s2 + $0x20] sm:$0xff] }
   0x8   :  { %v30_v15 = vld [vmem:[%s713_s1 + $0x18] sm:$0xff]  ;;  %v29_v16 = vld [vmem:[%s713_s1 + $0x10] sm:$0xff]  ;;  %v48_v18 = vld [vmem:[%s715_s3 + $0x28] sm:$0xff] }
   0x9   :  { %v54_v17 = vld [vmem:[%s716_s4 + $0x18] sm:$0xff]  ;;  %v47_v19 = vld [vmem:[%s715_s3 + $0x20] sm:$0xff]  ;;  %v28_v21 = vld [vmem:[%s713_s1 + $0x8] sm:$0xff] }
   0xa   :  { %218 = vperm.xlu1 %430, %v42_v4   ;;  %v38_v20 = vld [vmem:[%s714_s2 + $0x18] sm:$0xff]  ;;  %v37_v22 = vld [vmem:[%s714_s2 + $0x10] sm:$0xff]  ;;  %v52_v25 = vld [vmem:[%s716_s4 + $0x8] sm:$0xff] }
   0xb   :  { %94 = vperm.xlu0 %429, %v33_v5   ;;  %157 = vperm.xlu2 %431, %v57_v6   ;;  %v53_v23 = vld [vmem:[%s716_s4 + $0x10] sm:$0xff]  ;;  %v46_v24 = vld [vmem:[%s715_s3 + $0x18] sm:$0xff]  ;;  %v36_v26 = vld [vmem:[%s714_s2 + $0x8] sm:$0xff] }
   0xc   :  { %v27_v27 = vld [vmem:[%s713_s1] sm:$0xff]  ;;  %v45_v30 = vld [vmem:[%s715_s3 + $0x10] sm:$0xff]  ;;  %v44_v33 = vld [vmem:[%s715_s3 + $0x8] sm:$0xff] }
   0xd   :  { %v51_v28 = vld [vmem:[%s716_s4] sm:$0xff] }
   0xe   :  { %v35_v29 = vld [vmem:[%s714_s2] sm:$0xff] }
   0xf   :  { %v43_v31 = vld [vmem:[%s715_s3] sm:$0xff] }
  0x10   :  { %v60_v32 = vld [vmem:[%s718_s6] sm:$0x7]  ;;  %s491_s6 = smov [#allocation2]  }
  0x11   :  { %v61_v37 = vld [vmem:[%s712_s0] sm:$0x77]  ;;  %s414_s20 = sshll.u32 %s491_s6, 4  ;;  %s415_s20 = int_to_ptr.vmem [resolvable:$true] %s414_s20 }
  0x12   :  { %296 = vperm.xlu1 %430, %v50_v7   ;;  %v103_v40 = vperm.slane %v61_v37, 0  ;;  %v104_v41 = vperm.slane %v61_v37, 4  ;;  %v221_v42 = vperm.slane %v61_v37, 1  ;;  %v222_v43 = vperm.slane %v61_v37, 5 }
  0x13   :  { %213 = vperm.xlu0 %429, %v41_v8   ;;  %84 = vperm.xlu2 %431, %v31_v9   ;;  %v299_v53 = vperm.slane %v61_v37, 2  ;;  %v300_v54 = vperm.slane %v61_v37, 6 }
  0x14   :  { %v638_v44 = vperm.slane %v103_v40, 0  ;;  %v640_v45 = vperm.slane %v104_v41, 0  ;;  %v642_v48 = vperm.slane %v221_v42, 1  ;;  %v644_v49 = vperm.slane %v222_v43, 1 }
  0x15   :  { %v652_v61 = vperm.slane %v299_v53, 2  ;;  %v654_v62 = vperm.slane %v300_v54, 2 }
  0x1a   :  { %208 = vperm.xlu1 %430, %v40_v10  }
  0x1b   :  { %152 = vperm.xlu0 %429, %v56_v11   ;;  %291 = vperm.xlu2 %431, %v49_v12  }
  0x22   :  { %147 = vperm.xlu1 %430, %v55_v13  }
  0x23   :  { %203 = vperm.xlu2 %431, %v39_v14   ;;  %79 = vperm.xlu0 %429, %v30_v15  }
  0x2a   :  { %74 = vperm.xlu1 %430, %v29_v16  }
  0x2b   :  { %142 = vperm.xlu2 %431, %v54_v17   ;;  %286 = vperm.xlu0 %429, %v48_v18  }
  0x32   :  { %281 = vperm.xlu1 %430, %v47_v19  }
  0x33   :  { %198 = vperm.xlu0 %429, %v38_v20   ;;  %69 = vperm.xlu2 %431, %v28_v21  }
  0x3a   :  { %193 = vperm.xlu1 %430, %v37_v22  }
  0x3b   :  { %137 = vperm.xlu0 %429, %v53_v23   ;;  %276 = vperm.xlu2 %431, %v46_v24  }
  0x42   :  { %132 = vperm.xlu1 %430, %v52_v25  }
  0x43   :  { %188 = vperm.xlu2 %431, %v36_v26   ;;  %64 = vperm.xlu0 %429, %v27_v27  }
  0x4a   :  { %127 = vperm.xlu1 %430, %v51_v28  }
  0x4b   :  { %183 = vperm.xlu2 %431, %v35_v29   ;;  %271 = vperm.xlu0 %429, %v45_v30  }
  0x52   :  { %261 = vperm.xlu1 %430, %v43_v31  }
  0x53   :  { %355 = vperm.xlu2 %431, %v60_v32   ;;  %266 = vperm.xlu0 %429, %v44_v33  }
  0x5d   :  { %v631_v34 = vpop.permute.xlu2 %89 }
  0x5e   :  { %v119_v27 = vmul.f32 %v638_v44, %v631_v34  ;;  %v120_v28 = vmul.f32 %v640_v45, %v631_v34 }
  0x65   :  { %v158_v35 = vpop.permute.xlu2 %157 }
  0x6d   :  { %v633_v36 = vpop.permute.xlu2 %84 }
  0x6e   :  { %v117_v42 = vmul.f32 %v638_v44, %v633_v36  ;;  %v118_v34 = vmul.f32 %v640_v45, %v633_v36 }
  0x74   :  { %v163_v38 = vpop.permute.xlu1 %162 }
  0x75   :  { %v100_v39 = vpop.permute.xlu0 %99  ;;  %v292_v47 = vpop.permute.xlu2 %291 }
  0x76   :  { %v123_v51 = vmul.f32 %v638_v44, %v100_v39  ;;  %v124_v52 = vmul.f32 %v640_v45, %v100_v39  ;;  %v317_v12 = vmul.f32 %v652_v61, %v292_v47  ;;  %v318_v13 = vmul.f32 %v654_v62, %v292_v47 }
  0x78   :  { %v179_v59 = vadd.f32 %v163_v38, %v123_v51  ;;  %v180_v60 = vadd.f32 %v163_v38, %v124_v52 }
  0x7c   :  { %v219_v46 = vpop.permute.xlu1 %218 }
  0x7d   :  { %v95_v50 = vpop.permute.xlu0 %94  ;;  %v241_v55 = vmul.f32 %v642_v48, %v219_v46  ;;  %v242_v56 = vmul.f32 %v644_v49, %v219_v46  ;;  %v204_v9 = vpop.permute.xlu2 %203 }
  0x7e   :  { %v121_v57 = vmul.f32 %v638_v44, %v95_v50  ;;  %v122_v58 = vmul.f32 %v640_v45, %v95_v50  ;;  %v235_v53 = vmul.f32 %v642_v48, %v204_v9  ;;  %v236_v54 = vmul.f32 %v644_v49, %v204_v9 }
  0x7f   :  { %v257_v3 = vadd.f32 %v241_v55, %v179_v59  ;;  %v258_v4 = vadd.f32 %v242_v56, %v180_v60 }
  0x80   :  { %v177_v5 = vadd.f32 %v158_v35, %v121_v57  ;;  %v178_v6 = vadd.f32 %v158_v35, %v122_v58 }
  0x84   :  { %v297_v63 = vpop.permute.xlu1 %296 }
  0x85   :  { %v319_v0 = vmul.f32 %v652_v61, %v297_v63  ;;  %v320_v1 = vmul.f32 %v654_v62, %v297_v63  ;;  %v214_v2 = vpop.permute.xlu0 %213  ;;  %v143_v22 = vpop.permute.xlu2 %142 }
  0x86   :  { %v239_v7 = vmul.f32 %v642_v48, %v214_v2  ;;  %v240_v8 = vmul.f32 %v644_v49, %v214_v2 }
  0x87   :  { %v335_v10 = vadd.f32 %v319_v0, %v257_v3  ;;  %v336_v11 = vadd.f32 %v320_v1, %v258_v4 }
  0x88   :  { %v255_v14 = vadd.f32 %v239_v7, %v177_v5  ;;  %v256_v15 = vadd.f32 %v240_v8, %v178_v6 }
  0x89   :  { %432 = vtanh.f32 %v335_v10 }
  0x8a   :  { %v333_v16 = vadd.f32 %v317_v12, %v255_v14  ;;  %v334_v17 = vadd.f32 %v318_v13, %v256_v15  ;;  %434 = vtanh.f32 %v336_v11 }
  0x8c   :  { %436 = vtanh.f32 %v333_v16  ;;  %v209_v18 = vpop.permute.xlu1 %208 }
  0x8d   :  { %438 = vtanh.f32 %v334_v17  ;;  %v153_v19 = vpop.permute.xlu0 %152  ;;  %v237_v29 = vmul.f32 %v642_v48, %v209_v18  ;;  %v238_v30 = vmul.f32 %v644_v49, %v209_v18  ;;  %v668_v33 = vpop.permute.xlu2 %69 }
  0x8e   :  { %v175_v31 = vadd.f32 %v153_v19, %v119_v27  ;;  %v176_v32 = vadd.f32 %v153_v19, %v120_v28 }
  0x8f   :  { %v433_v20 = vpop.eup %432 }
  0x90   :  { %v435_v21 = vpop.eup %434  ;;  %370 = vmatpush.msra.mxu0 %v433_v20  ;;  %v253_v38 = vadd.f32 %v237_v29, %v175_v31  ;;  %v254_v39 = vadd.f32 %v238_v30, %v176_v32 }
  0x91   :  { %390 = vmatpush.msra.mxu1 %v435_v21 }
  0x92   :  { %v437_v23 = vpop.eup %436 }
  0x93   :  { %v439_v24 = vpop.eup %438  ;;  %371 = vmatpush.msra.mxu0 %v437_v23 }
  0x94   :  { %391 = vmatpush.msra.mxu1 %v439_v24  ;;  %v148_v25 = vpop.permute.xlu1 %147 }
  0x95   :  { %v80_v26 = vpop.permute.xlu0 %79  ;;  %v173_v47 = vadd.f32 %v148_v25, %v117_v42  ;;  %v174_v50 = vadd.f32 %v148_v25, %v118_v34  ;;  %v277_v58 = vpop.permute.xlu2 %276 }
  0x96   :  { %v115_v51 = vmul.f32 %v638_v44, %v80_v26  ;;  %v116_v52 = vmul.f32 %v640_v45, %v80_v26  ;;  %v311_v6 = vmul.f32 %v652_v61, %v277_v58  ;;  %v312_v7 = vmul.f32 %v654_v62, %v277_v58 }
  0x97   :  { %v251_v56 = vadd.f32 %v235_v53, %v173_v47  ;;  %v252_v57 = vadd.f32 %v236_v54, %v174_v50 }
  0x98   :  { %v171_v63 = vadd.f32 %v143_v22, %v115_v51  ;;  %v172_v0 = vadd.f32 %v143_v22, %v116_v52 }
  0x9c   :  { %v75_v35 = vpop.permute.xlu1 %74 }
  0x9d   :  { %v287_v37 = vpop.permute.xlu0 %286  ;;  %v113_v21 = vmul.f32 %v638_v44, %v75_v35  ;;  %v114_v22 = vmul.f32 %v640_v45, %v75_v35  ;;  %v189_v23 = vpop.permute.xlu2 %188  ;;  %v112_v35 = vmul.f32 %v640_v45, %v668_v33 }
  0x9e   :  { %v315_v40 = vmul.f32 %v652_v61, %v287_v37  ;;  %v316_v41 = vmul.f32 %v654_v62, %v287_v37  ;;  %v229_v47 = vmul.f32 %v642_v48, %v189_v23  ;;  %v230_v51 = vmul.f32 %v644_v49, %v189_v23 }
  0xa0   :  { %v331_v43 = vadd.f32 %v315_v40, %v253_v38  ;;  %v332_v46 = vadd.f32 %v316_v41, %v254_v39  ;;  %v111_v38 = vmul.f32 %v638_v44, %v668_v33 }
  0xa2   :  { %440 = vtanh.f32 %v331_v43 }
  0xa3   :  { %442 = vtanh.f32 %v332_v46 }
  0xa4   :  { %v282_v55 = vpop.permute.xlu1 %281 }
  0xa5   :  { %v199_v59 = vpop.permute.xlu0 %198  ;;  %v313_v36 = vmul.f32 %v652_v61, %v282_v55  ;;  %v314_v60 = vmul.f32 %v654_v62, %v282_v55  ;;  %v184_v34 = vpop.permute.xlu2 %183 }
  0xa6   :  { %v233_v1 = vmul.f32 %v642_v48, %v199_v59  ;;  %v234_v2 = vmul.f32 %v644_v49, %v199_v59  ;;  %v227_v33 = vmul.f32 %v642_v48, %v184_v34  ;;  %v228_v54 = vmul.f32 %v644_v49, %v184_v34 }
  0xa7   :  { %v329_v3 = vadd.f32 %v313_v36, %v251_v56  ;;  %v330_v4 = vadd.f32 %v314_v60, %v252_v57 }
  0xa8   :  { %v441_v5 = vpop.eup %440  ;;  %v249_v8 = vadd.f32 %v233_v1, %v171_v63  ;;  %v250_v9 = vadd.f32 %v234_v2, %v172_v0 }
  0xa9   :  { %v443_v10 = vpop.eup %442  ;;  %444 = vtanh.f32 %v329_v3  ;;  %372 = vmatpush.msra.mxu0 %v441_v5 }
  0xaa   :  { %v327_v11 = vadd.f32 %v311_v6, %v249_v8  ;;  %v328_v12 = vadd.f32 %v312_v7, %v250_v9  ;;  %446 = vtanh.f32 %v330_v4  ;;  %392 = vmatpush.msra.mxu1 %v443_v10 }
  0xac   :  { %448 = vtanh.f32 %v327_v11  ;;  %v194_v13 = vpop.permute.xlu1 %193 }
  0xad   :  { %450 = vtanh.f32 %v328_v12  ;;  %v138_v14 = vpop.permute.xlu0 %137  ;;  %v231_v26 = vmul.f32 %v642_v48, %v194_v13  ;;  %v232_v27 = vmul.f32 %v644_v49, %v194_v13  ;;  %v356_v6 = vpop.permute.xlu2 %355 }
  0xae   :  { %v169_v24 = vadd.f32 %v138_v14, %v113_v21  ;;  %v170_v25 = vadd.f32 %v138_v14, %v114_v22 }
  0xaf   :  { %v445_v15 = vpop.eup %444 }
  0xb0   :  { %v447_v16 = vpop.eup %446  ;;  %373 = vmatpush.msra.mxu0 %v445_v15  ;;  %v247_v30 = vadd.f32 %v231_v26, %v169_v24  ;;  %v248_v31 = vadd.f32 %v232_v27, %v170_v25 }
  0xb1   :  { %393 = vmatpush.msra.mxu1 %v447_v16 }
  0xb2   :  { %v449_v17 = vpop.eup %448 }
  0xb3   :  { %v451_v18 = vpop.eup %450  ;;  %374 = vmatpush.msra.mxu0 %v449_v17 }
  0xb4   :  { %394 = vmatpush.msra.mxu1 %v451_v18  ;;  %v133_v19 = vpop.permute.xlu1 %132 }
  0xb5   :  { %v65_v20 = vpop.permute.xlu0 %64  ;;  %v167_v41 = vadd.f32 %v133_v19, %v111_v38  ;;  %v168_v43 = vadd.f32 %v133_v19, %v112_v35 }
  0xb6   :  { %v109_v42 = vmul.f32 %v638_v44, %v65_v20  ;;  %v110_v46 = vmul.f32 %v640_v45, %v65_v20 }
  0xb7   :  { %v245_v55 = vadd.f32 %v229_v47, %v167_v41  ;;  %v246_v57 = vadd.f32 %v230_v51, %v168_v43 }
  0xbc   :  { %v128_v28 = vpop.permute.xlu1 %127 }
  0xbd   :  { %v272_v29 = vpop.permute.xlu0 %271  ;;  %v165_v50 = vadd.f32 %v128_v28, %v109_v42  ;;  %v166_v52 = vadd.f32 %v128_v28, %v110_v46 }
  0xbe   :  { %v309_v32 = vmul.f32 %v652_v61, %v272_v29  ;;  %v310_v37 = vmul.f32 %v654_v62, %v272_v29 }
  0xbf   :  { %v243_v36 = vadd.f32 %v227_v33, %v165_v50  ;;  %v244_v63 = vadd.f32 %v228_v54, %v166_v52 }
  0xc0   :  { %v325_v39 = vadd.f32 %v309_v32, %v247_v30  ;;  %v326_v40 = vadd.f32 %v310_v37, %v248_v31 }
  0xc2   :  { %452 = vtanh.f32 %v325_v39 }
  0xc3   :  { %454 = vtanh.f32 %v326_v40 }
  0xc4   :  { %v262_v53 = vpop.permute.xlu1 %261 }
  0xc5   :  { %v305_v44 = vmul.f32 %v652_v61, %v262_v53  ;;  %v267_v56 = vpop.permute.xlu0 %266  ;;  %v306_v45 = vmul.f32 %v654_v62, %v262_v53 }
  0xc6   :  { %v307_v58 = vmul.f32 %v652_v61, %v267_v56  ;;  %v308_v59 = vmul.f32 %v654_v62, %v267_v56  ;;  %v59_v61 = vld [vmem:[%s717_s5] sm:$0x7] }
  0xc7   :  { %v321_v48 = vadd.f32 %v305_v44, %v243_v36  ;;  %v322_v49 = vadd.f32 %v306_v45, %v244_v63 }
  0xc8   :  { %v453_v60 = vpop.eup %452  ;;  %v323_v0 = vadd.f32 %v307_v58, %v245_v55  ;;  %v324_v1 = vadd.f32 %v308_v59, %v246_v57 }
  0xc9   :  { %v455_v2 = vpop.eup %454  ;;  %375 = vmatpush.msra.mxu0 %v453_v60 }
  0xca   :  { %395 = vmatpush.msra.mxu1 %v455_v2  ;;  %456 = vtanh.f32 %v323_v0 }
  0xcb   :  { %458 = vtanh.f32 %v324_v1 }
  0xcc   :  { %460 = vtanh.f32 %v321_v48 }
  0xcd   :  { %462 = vtanh.f32 %v322_v49 }
  0xd0   :  { %v457_v3 = vpop.eup %456 }
  0xd1   :  { %v459_v4 = vpop.eup %458  ;;  %376 = vmatpush.msra.mxu0 %v457_v3 }
  0xd2   :  { %v461_v62 = vpop.eup %460  ;;  %396 = vmatpush.msra.mxu1 %v459_v4 }
  0xd3   :  { %v463_v5 = vpop.eup %462  ;;  %377 = vmatpush.msra.mxu0 %v461_v62 }
  0xd4   :  { %397 = vmatpush.msra.mxu1 %v463_v5  ;;  %425 = vmatmul.msk.f32.vlgmr.msra.gmra.mxu0 %vm358_vm0, %v59_v61 }
  0xd5   :  { %426 = vmatmul.msk.f32.vlgmr.msra.gmra.mxu1 %vm358_vm0, %v59_v61 }
 0x151   :  { %v379_v7 = vpop.f32.mrf.mxu0 }
 0x152   :  { %v399_v8 = vpop.f32.mrf.mxu1  ;;  %v380_v10 = vadd.f32 %v379_v7, %v356_v6 }
 0x153   :  { %v400_v9 = vadd.f32 %v399_v8, %v356_v6 }
 0x155   :  { %v404_v11 = vrot.slane %v400_v9, 4 }
 0x157   :  { %v406_v12 = vsel %vm405_vm1, %v380_v10, %v404_v11 }
 0x158   :  { %408 = vst [vmem:[#allocation2] sm:$0x77] %v406_v12 }
 0x159   :  { %419 = dma.vmem_to_hbm [thread:$0]  %s415_s20, 128, %s417_s23, [#allocation3]  }
 0x15a   :  { %488 = dma.done.wait [#allocation3], 128  }
 0x15b   :  { %489 = vsyncadd [#allocation3], 4294967168 }
 0x15c   :  { %424 = vsyncpa [#allocation3], 1 }

</bundles_post_ra>
